<compile_context>
chip_gen: v7x
topology: tpu7x:2x2x1
jax: 0.10.0
libtpu: 0.0.40
codegen_flags: <defaults>
</compile_context>

<pallas_src>
import jax
import jax.numpy as jnp
from jax.experimental import pallas as pl
from jax.experimental.pallas import tpu as pltpu

LANE = 128
_MIN_COPY_BYTES = 1 << 20    # below this, kernel launch overhead dominates -> metadata-only
_MAX_CHUNK_BYTES = 8 << 20   # per-DMA chunk cap
_MIN_CHUNKS = 8              # aim for several chunks so multiple DMAs stay in flight
_NUM_SLOTS = 4               # outstanding DMAs (per-slot semaphores)


def _pick_width(n):
    # Moderate lane-dense last dim (multiple of 128) dividing n.  Chunks are whole
    # contiguous rows, so width only sets the chunk granularity (row_bytes).
    for w in (32 * LANE, 16 * LANE, 8 * LANE, 4 * LANE, 2 * LANE, LANE):
        if n % w == 0:
            return w
    return None


def _make_dma_copy_kernel(rows, chunk_rows, n_chunks, num_slots):
    # HBM -> HBM chunked copy; no VMEM staging.  n_chunks is a small static int.
    def kernel(x_hbm, o_hbm, sems):
        pending = []
        for c in range(n_chunks):
            start = c * chunk_rows
            size = min(chunk_rows, rows - start)          # ragged last chunk handled statically
            cp = pltpu.make_async_copy(
                x_hbm.at[pl.ds(start, size), :],
                o_hbm.at[pl.ds(start, size), :],
                sems.at[c % num_slots])
            if c >= num_slots:
                pending[c - num_slots].wait()             # free the slot before reusing it
            cp.start()
            pending.append(cp)
        for cp in pending[-num_slots:]:
            cp.wait()
    return kernel


def _pallas_materialized_copy_2d(x2d):
    rows, width = x2d.shape
    itemsize = x2d.dtype.itemsize
    row_bytes = width * itemsize
    total_bytes = rows * row_bytes

    target_chunk = min(_MAX_CHUNK_BYTES, max(row_bytes, total_bytes // _MIN_CHUNKS))
    chunk_rows = max(1, target_chunk // row_bytes)
    n_chunks = -(-rows // chunk_rows)
    num_slots = max(1, min(_NUM_SLOTS, n_chunks))

    return pl.pallas_call(
        _make_dma_copy_kernel(rows, chunk_rows, n_chunks, num_slots),
        out_shape=jax.ShapeDtypeStruct((rows, width), x2d.dtype),
        in_specs=[pl.BlockSpec(memory_space=pl.ANY)],
        out_specs=pl.BlockSpec(memory_space=pl.ANY),
        scratch_shapes=[pltpu.SemaphoreType.DMA((num_slots,))],
        cost_estimate=pl.CostEstimate(
            flops=0, transcendentals=0, bytes_accessed=2 * total_bytes),
    )(x2d)


def pallas_reshape(x, target_shape, materialize=False):
    """Equivalent of torch.Tensor.view(target_shape).

    Default (materialize=False): metadata-only jnp.reshape, exactly like .view
    (no data movement).  materialize=True produces a fresh buffer via a chunked
    HBM->HBM DMA copy kernel when the array is large enough to amortize it.
    """
    if not materialize:
        return jnp.reshape(x, target_shape)

    n = x.size
    width = _pick_width(n)
    if width is None or n == 0 or n * x.dtype.itemsize < _MIN_COPY_BYTES:
        # Tiny or ragged element counts: the kernel would only add overhead;
        # the metadata-only result is value-identical.
        return jnp.reshape(x, target_shape)

    x2d = jnp.reshape(x, (n // width, width))   # metadata-only 2D view of the flat data
    out2d = _pallas_materialized_copy_2d(x2d)
    # target_shape may contain -1; jnp.reshape infers it like torch .view().
    return jnp.reshape(out2d, target_shape)


class Reshape:
    """Mirror of the PyTorch module: holds target_shape, applies it in forward."""

    def __init__(self, target_shape, materialize=False):
        self.target_shape = tuple(target_shape)
        self.materialize = materialize

    def __call__(self, x):
        return pallas_reshape(x, self.target_shape, materialize=self.materialize)


if __name__ == "__main__":
    root = jax.random.PRNGKey(0)
    k0, k1, k2, k3, k4 = jax.random.split(root, 5)

    # SNGAN usage: dense(z) output reshaped to a feature map (-1, C, H, W).
    # Small shapes: batch=2, C=16, H=W=4 -> input (2, 256).  Default path = view
    # semantics, metadata-only (no kernel, as the reference .view never copies).
    batch, C, H, W = 2, 16, 4, 4
    x = jax.random.normal(k0, (batch, C * H * W), dtype=jnp.float32)
    out = jax.block_until_ready(Reshape((-1, C, H, W))(x))
    assert out.shape == (batch, C, H, W), out.shape
    assert out.dtype == x.dtype
    assert bool(jnp.array_equal(out, jnp.reshape(x, (-1, C, H, W))))

    # Materialized copy path: 1 MiB f32 -> width=4096, 8 chunks of 8 rows,
    # 4 DMA slots reused (exercises the HBM->HBM DMA kernel).
    xm = jax.random.normal(k1, (2048, 128), dtype=jnp.float32)
    outm = jax.block_until_ready(Reshape((-1, 64, 64), materialize=True)(xm))
    assert outm.shape == (64, 64, 64)
    assert bool(jnp.array_equal(outm, jnp.reshape(xm, (-1, 64, 64))))

    # Materialized path with a ragged last chunk: 68 rows of 4096 -> 9 chunks of 8
    # rows with a final 4-row chunk.
    xr = jax.random.normal(k2, (2176, 128), dtype=jnp.float32)
    outr = jax.block_until_ready(Reshape((68, 4096), materialize=True)(xr))
    assert bool(jnp.array_equal(outr, jnp.reshape(xr, (68, 4096))))

    # materialize=True on a tiny array -> below the 1 MiB threshold, clean fallback.
    xs = jax.random.normal(k3, (2, 4, 64), dtype=jnp.bfloat16)
    outs = jax.block_until_ready(Reshape((-1, 128), materialize=True)(xs))
    assert bool(jnp.array_equal(outs, jnp.reshape(xs, (-1, 128))))

    # Ragged element count (not a multiple of 128) -> metadata-only fallback.
    x4 = jax.random.normal(k4, (2, 3, 5), dtype=jnp.float32)
    out4 = jax.block_until_ready(Reshape((-1, 15), materialize=True)(x4))
    assert bool(jnp.array_equal(out4, jnp.reshape(x4, (-1, 15))))

    print("KERNEL_OK")
</pallas_src>

<mosaic_0001>
module attributes {stable_mosaic.version = 11 : i64} {
  func.func @kernel(%arg0: memref<64x4096xf32, #tpu.memory_space<any>>, %arg1: memref<64x4096xf32, #tpu.memory_space<any>>, %arg2: memref<4x!tpu.dma_semaphore, #tpu.memory_space<semaphore_mem>>) attributes {dimension_semantics = [], scalar_prefetch = 0 : i64, scratch_operands = 1 : i64, tpu.core_type = #tpu.core_type<tc>} {
    %c0_i32 = arith.constant 0 : i32
    %c0_i32_0 = arith.constant 0 : i32
    %c0_i32_1 = arith.constant 0 : i32
    %0 = tpu.memref_slice %arg0[%c0_i32_0, %c0_i32_1] : memref<64x4096xf32, #tpu.memory_space<any>> -> memref<8x4096xf32, #tpu.memory_space<any>>
    %c0_i32_2 = arith.constant 0 : i32
    %c0_i32_3 = arith.constant 0 : i32
    %1 = tpu.memref_slice %arg1[%c0_i32_2, %c0_i32_3] : memref<64x4096xf32, #tpu.memory_space<any>> -> memref<8x4096xf32, #tpu.memory_space<any>>
    %2 = tpu.memref_slice %arg2[%c0_i32] : memref<4x!tpu.dma_semaphore, #tpu.memory_space<semaphore_mem>> -> memref<1x!tpu.dma_semaphore, #tpu.memory_space<semaphore_mem>>
    %3 = tpu.memref_squeeze %2 : memref<1x!tpu.dma_semaphore, #tpu.memory_space<semaphore_mem>> -> memref<!tpu.dma_semaphore, #tpu.memory_space<semaphore_mem>>
    tpu.enqueue_dma source(%0 : memref<8x4096xf32, #tpu.memory_space<any>>) target(%1 : memref<8x4096xf32, #tpu.memory_space<any>>) target_semaphore(%3 : memref<!tpu.dma_semaphore, #tpu.memory_space<semaphore_mem>>)
    %c1_i32 = arith.constant 1 : i32
    %c8_i32 = arith.constant 8 : i32
    %c0_i32_4 = arith.constant 0 : i32
    %4 = tpu.memref_slice %arg0[%c8_i32, %c0_i32_4] : memref<64x4096xf32, #tpu.memory_space<any>> -> memref<8x4096xf32, #tpu.memory_space<any>>
    %c8_i32_5 = arith.constant 8 : i32
    %c0_i32_6 = arith.constant 0 : i32
    %5 = tpu.memref_slice %arg1[%c8_i32_5, %c0_i32_6] : memref<64x4096xf32, #tpu.memory_space<any>> -> memref<8x4096xf32, #tpu.memory_space<any>>
    %6 = tpu.memref_slice %arg2[%c1_i32] : memref<4x!tpu.dma_semaphore, #tpu.memory_space<semaphore_mem>> -> memref<1x!tpu.dma_semaphore, #tpu.memory_space<semaphore_mem>>
    %7 = tpu.memref_squeeze %6 : memref<1x!tpu.dma_semaphore, #tpu.memory_space<semaphore_mem>> -> memref<!tpu.dma_semaphore, #tpu.memory_space<semaphore_mem>>
    tpu.enqueue_dma source(%4 : memref<8x4096xf32, #tpu.memory_space<any>>) target(%5 : memref<8x4096xf32, #tpu.memory_space<any>>) target_semaphore(%7 : memref<!tpu.dma_semaphore, #tpu.memory_space<semaphore_mem>>)
    %c2_i32 = arith.constant 2 : i32
    %c16_i32 = arith.constant 16 : i32
    %c0_i32_7 = arith.constant 0 : i32
    %8 = tpu.memref_slice %arg0[%c16_i32, %c0_i32_7] : memref<64x4096xf32, #tpu.memory_space<any>> -> memref<8x4096xf32, #tpu.memory_space<any>>
    %c16_i32_8 = arith.constant 16 : i32
    %c0_i32_9 = arith.constant 0 : i32
    %9 = tpu.memref_slice %arg1[%c16_i32_8, %c0_i32_9] : memref<64x4096xf32, #tpu.memory_space<any>> -> memref<8x4096xf32, #tpu.memory_space<any>>
    %10 = tpu.memref_slice %arg2[%c2_i32] : memref<4x!tpu.dma_semaphore, #tpu.memory_space<semaphore_mem>> -> memref<1x!tpu.dma_semaphore, #tpu.memory_space<semaphore_mem>>
    %11 = tpu.memref_squeeze %10 : memref<1x!tpu.dma_semaphore, #tpu.memory_space<semaphore_mem>> -> memref<!tpu.dma_semaphore, #tpu.memory_space<semaphore_mem>>
    tpu.enqueue_dma source(%8 : memref<8x4096xf32, #tpu.memory_space<any>>) target(%9 : memref<8x4096xf32, #tpu.memory_space<any>>) target_semaphore(%11 : memref<!tpu.dma_semaphore, #tpu.memory_space<semaphore_mem>>)
    %c3_i32 = arith.constant 3 : i32
    %c24_i32 = arith.constant 24 : i32
    %c0_i32_10 = arith.constant 0 : i32
    %12 = tpu.memref_slice %arg0[%c24_i32, %c0_i32_10] : memref<64x4096xf32, #tpu.memory_space<any>> -> memref<8x4096xf32, #tpu.memory_space<any>>
    %c24_i32_11 = arith.constant 24 : i32
    %c0_i32_12 = arith.constant 0 : i32
    %13 = tpu.memref_slice %arg1[%c24_i32_11, %c0_i32_12] : memref<64x4096xf32, #tpu.memory_space<any>> -> memref<8x4096xf32, #tpu.memory_space<any>>
    %14 = tpu.memref_slice %arg2[%c3_i32] : memref<4x!tpu.dma_semaphore, #tpu.memory_space<semaphore_mem>> -> memref<1x!tpu.dma_semaphore, #tpu.memory_space<semaphore_mem>>
    %15 = tpu.memref_squeeze %14 : memref<1x!tpu.dma_semaphore, #tpu.memory_space<semaphore_mem>> -> memref<!tpu.dma_semaphore, #tpu.memory_space<semaphore_mem>>
    tpu.enqueue_dma source(%12 : memref<8x4096xf32, #tpu.memory_space<any>>) target(%13 : memref<8x4096xf32, #tpu.memory_space<any>>) target_semaphore(%15 : memref<!tpu.dma_semaphore, #tpu.memory_space<semaphore_mem>>)
    %c0_i32_13 = arith.constant 0 : i32
    %c0_i32_14 = arith.constant 0 : i32
    %c0_i32_15 = arith.constant 0 : i32
    %16 = tpu.memref_slice %arg0[%c0_i32_14, %c0_i32_15] : memref<64x4096xf32, #tpu.memory_space<any>> -> memref<8x4096xf32, #tpu.memory_space<any>>
    %c0_i32_16 = arith.constant 0 : i32
    %c0_i32_17 = arith.constant 0 : i32
    %17 = tpu.memref_slice %arg1[%c0_i32_16, %c0_i32_17] : memref<64x4096xf32, #tpu.memory_space<any>> -> memref<8x4096xf32, #tpu.memory_space<any>>
    %18 = tpu.memref_slice %arg2[%c0_i32_13] : memref<4x!tpu.dma_semaphore, #tpu.memory_space<semaphore_mem>> -> memref<1x!tpu.dma_semaphore, #tpu.memory_space<semaphore_mem>>
    %19 = tpu.memref_squeeze %18 : memref<1x!tpu.dma_semaphore, #tpu.memory_space<semaphore_mem>> -> memref<!tpu.dma_semaphore, #tpu.memory_space<semaphore_mem>>
    tpu.wait_dma2 semaphore(%19 : memref<!tpu.dma_semaphore, #tpu.memory_space<semaphore_mem>>) src(%16 : memref<8x4096xf32, #tpu.memory_space<any>>) dst(%17 : memref<8x4096xf32, #tpu.memory_space<any>>)
    %c0_i32_18 = arith.constant 0 : i32
    %c32_i32 = arith.constant 32 : i32
    %c0_i32_19 = arith.constant 0 : i32
    %20 = tpu.memref_slice %arg0[%c32_i32, %c0_i32_19] : memref<64x4096xf32, #tpu.memory_space<any>> -> memref<8x4096xf32, #tpu.memory_space<any>>
    %c32_i32_20 = arith.constant 32 : i32
    %c0_i32_21 = arith.constant 0 : i32
    %21 = tpu.memref_slice %arg1[%c32_i32_20, %c0_i32_21] : memref<64x4096xf32, #tpu.memory_space<any>> -> memref<8x4096xf32, #tpu.memory_space<any>>
    %22 = tpu.memref_slice %arg2[%c0_i32_18] : memref<4x!tpu.dma_semaphore, #tpu.memory_space<semaphore_mem>> -> memref<1x!tpu.dma_semaphore, #tpu.memory_space<semaphore_mem>>
    %23 = tpu.memref_squeeze %22 : memref<1x!tpu.dma_semaphore, #tpu.memory_space<semaphore_mem>> -> memref<!tpu.dma_semaphore, #tpu.memory_space<semaphore_mem>>
    tpu.enqueue_dma source(%20 : memref<8x4096xf32, #tpu.memory_space<any>>) target(%21 : memref<8x4096xf32, #tpu.memory_space<any>>) target_semaphore(%23 : memref<!tpu.dma_semaphore, #tpu.memory_space<semaphore_mem>>)
    %c1_i32_22 = arith.constant 1 : i32
    %c8_i32_23 = arith.constant 8 : i32
    %c0_i32_24 = arith.constant 0 : i32
    %24 = tpu.memref_slice %arg0[%c8_i32_23, %c0_i32_24] : memref<64x4096xf32, #tpu.memory_space<any>> -> memref<8x4096xf32, #tpu.memory_space<any>>
    %c8_i32_25 = arith.constant 8 : i32
    %c0_i32_26 = arith.constant 0 : i32
    %25 = tpu.memref_slice %arg1[%c8_i32_25, %c0_i32_26] : memref<64x4096xf32, #tpu.memory_space<any>> -> memref<8x4096xf32, #tpu.memory_space<any>>
    %26 = tpu.memref_slice %arg2[%c1_i32_22] : memref<4x!tpu.dma_semaphore, #tpu.memory_space<semaphore_mem>> -> memref<1x!tpu.dma_semaphore, #tpu.memory_space<semaphore_mem>>
    %27 = tpu.memref_squeeze %26 : memref<1x!tpu.dma_semaphore, #tpu.memory_space<semaphore_mem>> -> memref<!tpu.dma_semaphore, #tpu.memory_space<semaphore_mem>>
    tpu.wait_dma2 semaphore(%27 : memref<!tpu.dma_semaphore, #tpu.memory_space<semaphore_mem>>) src(%24 : memref<8x4096xf32, #tpu.memory_space<any>>) dst(%25 : memref<8x4096xf32, #tpu.memory_space<any>>)
    %c1_i32_27 = arith.constant 1 : i32
    %c40_i32 = arith.constant 40 : i32
    %c0_i32_28 = arith.constant 0 : i32
    %28 = tpu.memref_slice %arg0[%c40_i32, %c0_i32_28] : memref<64x4096xf32, #tpu.memory_space<any>> -> memref<8x4096xf32, #tpu.memory_space<any>>
    %c40_i32_29 = arith.constant 40 : i32
    %c0_i32_30 = arith.constant 0 : i32
    %29 = tpu.memref_slice %arg1[%c40_i32_29, %c0_i32_30] : memref<64x4096xf32, #tpu.memory_space<any>> -> memref<8x4096xf32, #tpu.memory_space<any>>
    %30 = tpu.memref_slice %arg2[%c1_i32_27] : memref<4x!tpu.dma_semaphore, #tpu.memory_space<semaphore_mem>> -> memref<1x!tpu.dma_semaphore, #tpu.memory_space<semaphore_mem>>
    %31 = tpu.memref_squeeze %30 : memref<1x!tpu.dma_semaphore, #tpu.memory_space<semaphore_mem>> -> memref<!tpu.dma_semaphore, #tpu.memory_space<semaphore_mem>>
    tpu.enqueue_dma source(%28 : memref<8x4096xf32, #tpu.memory_space<any>>) target(%29 : memref<8x4096xf32, #tpu.memory_space<any>>) target_semaphore(%31 : memref<!tpu.dma_semaphore, #tpu.memory_space<semaphore_mem>>)
    %c2_i32_31 = arith.constant 2 : i32
    %c16_i32_32 = arith.constant 16 : i32
    %c0_i32_33 = arith.constant 0 : i32
    %32 = tpu.memref_slice %arg0[%c16_i32_32, %c0_i32_33] : memref<64x4096xf32, #tpu.memory_space<any>> -> memref<8x4096xf32, #tpu.memory_space<any>>
    %c16_i32_34 = arith.constant 16 : i32
    %c0_i32_35 = arith.constant 0 : i32
    %33 = tpu.memref_slice %arg1[%c16_i32_34, %c0_i32_35] : memref<64x4096xf32, #tpu.memory_space<any>> -> memref<8x4096xf32, #tpu.memory_space<any>>
    %34 = tpu.memref_slice %arg2[%c2_i32_31] : memref<4x!tpu.dma_semaphore, #tpu.memory_space<semaphore_mem>> -> memref<1x!tpu.dma_semaphore, #tpu.memory_space<semaphore_mem>>
    %35 = tpu.memref_squeeze %34 : memref<1x!tpu.dma_semaphore, #tpu.memory_space<semaphore_mem>> -> memref<!tpu.dma_semaphore, #tpu.memory_space<semaphore_mem>>
    tpu.wait_dma2 semaphore(%35 : memref<!tpu.dma_semaphore, #tpu.memory_space<semaphore_mem>>) src(%32 : memref<8x4096xf32, #tpu.memory_space<any>>) dst(%33 : memref<8x4096xf32, #tpu.memory_space<any>>)
    %c2_i32_36 = arith.constant 2 : i32
    %c48_i32 = arith.constant 48 : i32
    %c0_i32_37 = arith.constant 0 : i32
    %36 = tpu.memref_slice %arg0[%c48_i32, %c0_i32_37] : memref<64x4096xf32, #tpu.memory_space<any>> -> memref<8x4096xf32, #tpu.memory_space<any>>
    %c48_i32_38 = arith.constant 48 : i32
    %c0_i32_39 = arith.constant 0 : i32
    %37 = tpu.memref_slice %arg1[%c48_i32_38, %c0_i32_39] : memref<64x4096xf32, #tpu.memory_space<any>> -> memref<8x4096xf32, #tpu.memory_space<any>>
    %38 = tpu.memref_slice %arg2[%c2_i32_36] : memref<4x!tpu.dma_semaphore, #tpu.memory_space<semaphore_mem>> -> memref<1x!tpu.dma_semaphore, #tpu.memory_space<semaphore_mem>>
    %39 = tpu.memref_squeeze %38 : memref<1x!tpu.dma_semaphore, #tpu.memory_space<semaphore_mem>> -> memref<!tpu.dma_semaphore, #tpu.memory_space<semaphore_mem>>
    tpu.enqueue_dma source(%36 : memref<8x4096xf32, #tpu.memory_space<any>>) target(%37 : memref<8x4096xf32, #tpu.memory_space<any>>) target_semaphore(%39 : memref<!tpu.dma_semaphore, #tpu.memory_space<semaphore_mem>>)
    %c3_i32_40 = arith.constant 3 : i32
    %c24_i32_41 = arith.constant 24 : i32
    %c0_i32_42 = arith.constant 0 : i32
    %40 = tpu.memref_slice %arg0[%c24_i32_41, %c0_i32_42] : memref<64x4096xf32, #tpu.memory_space<any>> -> memref<8x4096xf32, #tpu.memory_space<any>>
    %c24_i32_43 = arith.constant 24 : i32
    %c0_i32_44 = arith.constant 0 : i32
    %41 = tpu.memref_slice %arg1[%c24_i32_43, %c0_i32_44] : memref<64x4096xf32, #tpu.memory_space<any>> -> memref<8x4096xf32, #tpu.memory_space<any>>
    %42 = tpu.memref_slice %arg2[%c3_i32_40] : memref<4x!tpu.dma_semaphore, #tpu.memory_space<semaphore_mem>> -> memref<1x!tpu.dma_semaphore, #tpu.memory_space<semaphore_mem>>
    %43 = tpu.memref_squeeze %42 : memref<1x!tpu.dma_semaphore, #tpu.memory_space<semaphore_mem>> -> memref<!tpu.dma_semaphore, #tpu.memory_space<semaphore_mem>>
    tpu.wait_dma2 semaphore(%43 : memref<!tpu.dma_semaphore, #tpu.memory_space<semaphore_mem>>) src(%40 : memref<8x4096xf32, #tpu.memory_space<any>>) dst(%41 : memref<8x4096xf32, #tpu.memory_space<any>>)
    %c3_i32_45 = arith.constant 3 : i32
    %c56_i32 = arith.constant 56 : i32
    %c0_i32_46 = arith.constant 0 : i32
    %44 = tpu.memref_slice %arg0[%c56_i32, %c0_i32_46] : memref<64x4096xf32, #tpu.memory_space<any>> -> memref<8x4096xf32, #tpu.memory_space<any>>
    %c56_i32_47 = arith.constant 56 : i32
    %c0_i32_48 = arith.constant 0 : i32
    %45 = tpu.memref_slice %arg1[%c56_i32_47, %c0_i32_48] : memref<64x4096xf32, #tpu.memory_space<any>> -> memref<8x4096xf32, #tpu.memory_space<any>>
    %46 = tpu.memref_slice %arg2[%c3_i32_45] : memref<4x!tpu.dma_semaphore, #tpu.memory_space<semaphore_mem>> -> memref<1x!tpu.dma_semaphore, #tpu.memory_space<semaphore_mem>>
    %47 = tpu.memref_squeeze %46 : memref<1x!tpu.dma_semaphore, #tpu.memory_space<semaphore_mem>> -> memref<!tpu.dma_semaphore, #tpu.memory_space<semaphore_mem>>
    tpu.enqueue_dma source(%44 : memref<8x4096xf32, #tpu.memory_space<any>>) target(%45 : memref<8x4096xf32, #tpu.memory_space<any>>) target_semaphore(%47 : memref<!tpu.dma_semaphore, #tpu.memory_space<semaphore_mem>>)
    %c0_i32_49 = arith.constant 0 : i32
    %c32_i32_50 = arith.constant 32 : i32
    %c0_i32_51 = arith.constant 0 : i32
    %48 = tpu.memref_slice %arg0[%c32_i32_50, %c0_i32_51] : memref<64x4096xf32, #tpu.memory_space<any>> -> memref<8x4096xf32, #tpu.memory_space<any>>
    %c32_i32_52 = arith.constant 32 : i32
    %c0_i32_53 = arith.constant 0 : i32
    %49 = tpu.memref_slice %arg1[%c32_i32_52, %c0_i32_53] : memref<64x4096xf32, #tpu.memory_space<any>> -> memref<8x4096xf32, #tpu.memory_space<any>>
    %50 = tpu.memref_slice %arg2[%c0_i32_49] : memref<4x!tpu.dma_semaphore, #tpu.memory_space<semaphore_mem>> -> memref<1x!tpu.dma_semaphore, #tpu.memory_space<semaphore_mem>>
    %51 = tpu.memref_squeeze %50 : memref<1x!tpu.dma_semaphore, #tpu.memory_space<semaphore_mem>> -> memref<!tpu.dma_semaphore, #tpu.memory_space<semaphore_mem>>
    tpu.wait_dma2 semaphore(%51 : memref<!tpu.dma_semaphore, #tpu.memory_space<semaphore_mem>>) src(%48 : memref<8x4096xf32, #tpu.memory_space<any>>) dst(%49 : memref<8x4096xf32, #tpu.memory_space<any>>)
    %c1_i32_54 = arith.constant 1 : i32
    %c40_i32_55 = arith.constant 40 : i32
    %c0_i32_56 = arith.constant 0 : i32
    %52 = tpu.memref_slice %arg0[%c40_i32_55, %c0_i32_56] : memref<64x4096xf32, #tpu.memory_space<any>> -> memref<8x4096xf32, #tpu.memory_space<any>>
    %c40_i32_57 = arith.constant 40 : i32
    %c0_i32_58 = arith.constant 0 : i32
    %53 = tpu.memref_slice %arg1[%c40_i32_57, %c0_i32_58] : memref<64x4096xf32, #tpu.memory_space<any>> -> memref<8x4096xf32, #tpu.memory_space<any>>
    %54 = tpu.memref_slice %arg2[%c1_i32_54] : memref<4x!tpu.dma_semaphore, #tpu.memory_space<semaphore_mem>> -> memref<1x!tpu.dma_semaphore, #tpu.memory_space<semaphore_mem>>
    %55 = tpu.memref_squeeze %54 : memref<1x!tpu.dma_semaphore, #tpu.memory_space<semaphore_mem>> -> memref<!tpu.dma_semaphore, #tpu.memory_space<semaphore_mem>>
    tpu.wait_dma2 semaphore(%55 : memref<!tpu.dma_semaphore, #tpu.memory_space<semaphore_mem>>) src(%52 : memref<8x4096xf32, #tpu.memory_space<any>>) dst(%53 : memref<8x4096xf32, #tpu.memory_space<any>>)
    %c2_i32_59 = arith.constant 2 : i32
    %c48_i32_60 = arith.constant 48 : i32
    %c0_i32_61 = arith.constant 0 : i32
    %56 = tpu.memref_slice %arg0[%c48_i32_60, %c0_i32_61] : memref<64x4096xf32, #tpu.memory_space<any>> -> memref<8x4096xf32, #tpu.memory_space<any>>
    %c48_i32_62 = arith.constant 48 : i32
    %c0_i32_63 = arith.constant 0 : i32
    %57 = tpu.memref_slice %arg1[%c48_i32_62, %c0_i32_63] : memref<64x4096xf32, #tpu.memory_space<any>> -> memref<8x4096xf32, #tpu.memory_space<any>>
    %58 = tpu.memref_slice %arg2[%c2_i32_59] : memref<4x!tpu.dma_semaphore, #tpu.memory_space<semaphore_mem>> -> memref<1x!tpu.dma_semaphore, #tpu.memory_space<semaphore_mem>>
    %59 = tpu.memref_squeeze %58 : memref<1x!tpu.dma_semaphore, #tpu.memory_space<semaphore_mem>> -> memref<!tpu.dma_semaphore, #tpu.memory_space<semaphore_mem>>
    tpu.wait_dma2 semaphore(%59 : memref<!tpu.dma_semaphore, #tpu.memory_space<semaphore_mem>>) src(%56 : memref<8x4096xf32, #tpu.memory_space<any>>) dst(%57 : memref<8x4096xf32, #tpu.memory_space<any>>)
    %c3_i32_64 = arith.constant 3 : i32
    %c56_i32_65 = arith.constant 56 : i32
    %c0_i32_66 = arith.constant 0 : i32
    %60 = tpu.memref_slice %arg0[%c56_i32_65, %c0_i32_66] : memref<64x4096xf32, #tpu.memory_space<any>> -> memref<8x4096xf32, #tpu.memory_space<any>>
    %c56_i32_67 = arith.constant 56 : i32
    %c0_i32_68 = arith.constant 0 : i32
    %61 = tpu.memref_slice %arg1[%c56_i32_67, %c0_i32_68] : memref<64x4096xf32, #tpu.memory_space<any>> -> memref<8x4096xf32, #tpu.memory_space<any>>
    %62 = tpu.memref_slice %arg2[%c3_i32_64] : memref<4x!tpu.dma_semaphore, #tpu.memory_space<semaphore_mem>> -> memref<1x!tpu.dma_semaphore, #tpu.memory_space<semaphore_mem>>
    %63 = tpu.memref_squeeze %62 : memref<1x!tpu.dma_semaphore, #tpu.memory_space<semaphore_mem>> -> memref<!tpu.dma_semaphore, #tpu.memory_space<semaphore_mem>>
    tpu.wait_dma2 semaphore(%63 : memref<!tpu.dma_semaphore, #tpu.memory_space<semaphore_mem>>) src(%60 : memref<8x4096xf32, #tpu.memory_space<any>>) dst(%61 : memref<8x4096xf32, #tpu.memory_space<any>>)
    return
  }
}

</mosaic_0001>

<bundles_post_ra>
// kernel: tpu_custom_call.1
= control target key start
LH: loop header
LB: loop body
LE: loop exit
PB: predicated region body
PF: predicated region fallthrough
CT: control target
= control target key end

     0   :  { %s205_s9 = smov [#allocation2]   ;;  %s206_s10 = smov [#allocation3]   ;;  %s286_s0 = inlined_call_operand.hbm [shape: f32[64,4096], index: 0, kind: input, shape index: {}]   ;;  %s287_s1 = inlined_call_operand.hbm [shape: f32[64,4096], index: 1, kind: output, shape index: {}]  }
   0x1   :  { %s19_s8 = scalar_lea.hbm %s286_s0, 4096  ;;  %s207_s11 = smov 0  }
   0x2   :  { %18 = dma.general %s286_s0, 4096, %s287_s1, %s205_s9, %s206_s10, [#allocation4], %s207_s11, 0  }
   0x3   :  { %s20_s18 = scalar_lea.hbm %s287_s1, 4096  ;;  %s35_s21 = scalar_lea.hbm %s286_s0, 8192 }
   0x4   :  { %s208_s22 = smov [#allocation2 + $0x1]   ;;  %s209_s23 = smov [#allocation5]  }
   0x5   :  { %34 = dma.general %s19_s8, 4096, %s20_s18, %s208_s22, %s209_s23, [#allocation6], %s207_s11, 0  }
   0x6   :  { %s36_s26 = scalar_lea.hbm %s287_s1, 8192  ;;  %s51_s29 = scalar_lea.hbm %s286_s0, 12288 }
   0x7   :  { %s210_s30 = smov [#allocation2 + $0x2]   ;;  %s211_s2 = smov [#allocation7]  }
   0x8   :  { %50 = dma.general %s35_s21, 4096, %s36_s26, %s210_s30, %s211_s2, [#allocation8], %s207_s11, 0  }
   0x9   :  { %s52_s5 = scalar_lea.hbm %s287_s1, 12288  ;;  %s212_s6 = smov [#allocation2 + $0x3]  }
   0xa   :  { %s213_s7 = smov [#allocation9]  }
   0xb   :  { %66 = dma.general %s51_s29, 4096, %s52_s5, %s212_s6, %s213_s7, [#allocation10], %s207_s11, 0  }
   0xc   :  { %189 = dma.done.wait [#allocation2], 4096 }
   0xd   :  { %190 = vsyncadd [#allocation2], 4294963200  ;;  %s71_s12 = scalar_lea.hbm %s286_s0, 16384  ;;  %s72_s15 = scalar_lea.hbm %s287_s1, 16384 }
   0xe   :  { %s214_s16 = smov [#allocation11]  }
   0xf   :  { %85 = dma.general %s71_s12, 4096, %s72_s15, %s205_s9, %s214_s16, [#allocation12], %s207_s11, 0  }
  0x10   :  { %191 = dma.done.wait [#allocation2 + $0x1], 4096 }
  0x11   :  { %192 = vsyncadd [#allocation2 + $0x1], 4294963200  ;;  %s88_s19 = scalar_lea.hbm %s286_s0, 20480  ;;  %s89_s23 = scalar_lea.hbm %s287_s1, 20480 }
  0x12   :  { %s215_s24 = smov [#allocation13]  }
  0x13   :  { %102 = dma.general %s88_s19, 4096, %s89_s23, %s208_s22, %s215_s24, [#allocation14], %s207_s11, 0  }
  0x14   :  { %193 = dma.done.wait [#allocation2 + $0x2], 4096 }
  0x15   :  { %194 = vsyncadd [#allocation2 + $0x2], 4294963200  ;;  %s105_s27 = scalar_lea.hbm %s286_s0, 24576  ;;  %s106_s29 = scalar_lea.hbm %s287_s1, 24576 }
  0x16   :  { %s216_s2 = smov [#allocation15]  }
  0x17   :  { %119 = dma.general %s105_s27, 4096, %s106_s29, %s210_s30, %s216_s2, [#allocation16], %s207_s11, 0  }
  0x18   :  { %195 = dma.done.wait [#allocation2 + $0x3], 4096 }
  0x19   :  { %196 = vsyncadd [#allocation2 + $0x3], 4294963200  ;;  %s122_s5 = scalar_lea.hbm %s286_s0, 28672  ;;  %s123_s8 = scalar_lea.hbm %s287_s1, 28672 }
  0x1a   :  { %s217_s10 = smov [#allocation17]  }
  0x1b   :  { %136 = dma.general %s122_s5, 4096, %s123_s8, %s212_s6, %s217_s10, [#allocation18], %s207_s11, 0  }
  0x1c   :  { %197 = dma.done.wait [#allocation2], 4096 }
  0x1d   :  { %198 = vsyncadd [#allocation2], 4294963200 }
  0x1e   :  { %199 = dma.done.wait [#allocation2 + $0x1], 4096 }
  0x1f   :  { %200 = vsyncadd [#allocation2 + $0x1], 4294963200 }
  0x20   :  { %201 = dma.done.wait [#allocation2 + $0x2], 4096 }
  0x21   :  { %202 = vsyncadd [#allocation2 + $0x2], 4294963200 }
  0x22   :  { %203 = dma.done.wait [#allocation2 + $0x3], 4096 }
  0x23   :  { %204 = vsyncadd [#allocation2 + $0x3], 4294963200 }
  0x24   :  { %145 = vsyncmov [#allocation2] }
  0x27   :  { %s146_s30 = vpop.sfrf %145 }
  0x28   :  { %p172_p0 = scmp.ne.s32.totalorder %s146_s30, 0 }
  0x2a   :  { %150 = shalt.err (%p172_p0)  }
  0x2b   :  { %152 = vsyncmov [#allocation2 + $0x1] }
  0x2e   :  { %s153_s0 = vpop.sfrf %152 }
  0x2f   :  { %p173_p1 = scmp.ne.s32.totalorder %s153_s0, 0 }
  0x31   :  { %157 = shalt.err (%p173_p1)  }
  0x32   :  { %159 = vsyncmov [#allocation2 + $0x2] }
  0x35   :  { %s160_s1 = vpop.sfrf %159 }
  0x36   :  { %p174_p2 = scmp.ne.s32.totalorder %s160_s1, 0 }
  0x38   :  { %164 = shalt.err (%p174_p2)  }
  0x39   :  { %166 = vsyncmov [#allocation2 + $0x3] }
  0x3c   :  { %s167_s11 = vpop.sfrf %166 }
  0x3d   :  { %p175_p3 = scmp.ne.s32.totalorder %s167_s11, 0 }
  0x3f   :  { %171 = shalt.err (%p175_p3)  }

</bundles_post_ra>
